<compile_context>
chip_gen: v5e
topology: v5e:2x2
jax: 0.10.0
libtpu: 0.0.40
codegen_flags: <defaults>
</compile_context>

<pallas_src>
import functools

import jax
import jax.numpy as jnp
import numpy as np
from jax import lax
from jax.experimental import pallas as pl
from jax.experimental.pallas import tpu as pltpu


def _round_up(x, m):
    return ((x + m - 1) // m) * m


def _num_tensorcores():
    """2 on v7x (2 TensorCores/chip), else 1 (v5e/v6e single TC)."""
    try:
        kind = jax.devices()[0].device_kind.lower()
    except Exception:
        return 1
    if "v7" in kind or "tpu7" in kind or "7x" in kind:
        return 2
    return 1


# ----------------------------------------------------------------------------
# Pallas kernel: Grammian  G = V @ V^T, pipelined reduction over the feature dim
# ----------------------------------------------------------------------------
def _grammian_kernel(v_ref, g_ref, *, tk, nk_per_split, d, mask_ragged):
    # Accumulator pattern: the output block index is constant across the k axis
    # (marked 'arbitrary'), so g_ref stays VMEM-resident; init on k == 0,
    # accumulate every feature tile.  g_ref is already 2-D (n, n) thanks to the
    # pl.Squeezed() leading dim in out_specs — no per-step reshape.
    k = pl.program_id(1)

    @pl.when(k == 0)
    def _init():
        g_ref[...] = jnp.zeros_like(g_ref)

    v = v_ref[...]  # (n, tk)

    if mask_ragged:
        # The last feature tile extends past the true d; zero the out-of-range
        # lanes so the stale/garbage tail contributes nothing to V V^T.
        c = pl.program_id(0)
        start = (c * nk_per_split + k) * tk
        lane = lax.broadcasted_iota(jnp.int32, v.shape, 1)
        v = jnp.where(lane + start < d, v, jnp.zeros_like(v))

    # partial G += V_k @ V_k^T  (contract over the feature tile; MXU, f32 acc)
    # TODO(synk): check the MLIR/bundle dump for an explicit vxpose of the RHS
    # tile from this transposed-contraction dot_general; if it becomes the
    # binding unit after the DMA fix, restructure the per-step dot.
    g_ref[...] += lax.dot_general(
        v, v, (((1,), (1,)), ((), ())), preferred_element_type=jnp.float32
    )


def grammian_pallas(vecs, *, tk=None, target_tile_bytes=4 * 1024 * 1024,
                    use_bf16=False):
    """G[i, j] = <V_i, V_j> as a d-tiled, double-buffered Pallas reduction.

    tk                : optional explicit feature tile (rounded to 128); by
                        default it is derived from a ~4 MiB-per-tile VMEM
                        budget so each grid step amortizes the ~0.35 µs step
                        overhead with a multi-MiB DMA.
    use_bf16          : optionally read V as bf16 (halves HBM bytes on this
                        mem-bound kernel) while accumulating in f32.  Off by
                        default to preserve the fp32 reference semantics.
    """
    n, d = vecs.shape
    compute_dtype = jnp.bfloat16 if use_bf16 else vecs.dtype
    v = vecs if vecs.dtype == compute_dtype else vecs.astype(compute_dtype)
    elem_bytes = jnp.dtype(compute_dtype).itemsize

    d_lane = _round_up(max(d, 1), 128)
    if d <= 128:
        tk_eff = d                                   # single full-extent tile
    elif tk is not None:
        tk_eff = min(_round_up(tk, 128), d_lane)
    else:
        # VMEM-budget-derived tile: ~target_tile_bytes per (n, tk) input tile.
        tk_eff = _round_up(max(target_tile_bytes // (elem_bytes * n), 1), 128)
        tk_eff = min(max(tk_eff, 512), d_lane)

    nk = -(-d // tk_eff)                             # feature tiles (last may be ragged)
    mask_ragged = (d % tk_eff) != 0

    # 2-way split across TensorCores only on v7x, and only when the tile count
    # divides evenly (avoids fully out-of-bounds blocks).  On single-TC chips
    # splits=1, so there is no extra output slab / partials sum.
    n_cores = _num_tensorcores()
    splits = n_cores
    if splits > 1 and (nk % splits != 0 or nk < 2 * splits):
        splits = 1
    nk_per_split = nk // splits
    # TODO(synk): on v7x verify the leading 'parallel' axis actually shards
    # across both TCs in xprof (try pltpu.CORE_PARALLEL if it does not).

    # vmem budget from the actual working set: double-buffered input tiles +
    # resident (n, n) accumulator (+ copy-out), with 2x headroom, capped per
    # generation (64 MiB physical per TC on v7x).
    tile_bytes = n * tk_eff * elem_bytes
    acc_bytes = n * n * 4
    phys_cap = (64 if n_cores == 2 else 100) * 1024 * 1024
    vmem_limit = int(min(phys_cap,
                         max(2 * (2 * tile_bytes + 2 * acc_bytes),
                             4 * 1024 * 1024)))

    kernel = functools.partial(
        _grammian_kernel, tk=tk_eff, nk_per_split=nk_per_split, d=d,
        mask_ragged=mask_ragged,
    )

    # TODO(synk): if xprof still shows exposed DMA between steps, add
    # pipeline_mode=pl.Buffered(3) on the input BlockSpec (keep 3*tile under
    # the per-gen VMEM budget).
    partials = pl.pallas_call(
        kernel,
        out_shape=jax.ShapeDtypeStruct((splits, n, n), jnp.float32),
        grid=(splits, nk_per_split),
        in_specs=[
            pl.BlockSpec((n, tk_eff), lambda c, k: (0, c * nk_per_split + k)),
        ],
        out_specs=pl.BlockSpec((pl.Squeezed(), n, n), lambda c, k: (c, 0, 0)),
        compiler_params=pltpu.CompilerParams(
            dimension_semantics=("parallel", "arbitrary"),
            vmem_limit_bytes=vmem_limit,
        ),
    )(v)

    if splits > 1:
        return jnp.sum(partials, axis=0)
    return partials[0]


def compute_grammian(vecs, *, force_pallas=False, use_bf16=False):
    """Small problems (V < ~2 MiB) bypass Pallas: a fused XLA dot is strictly
    faster than the pallas_call launch + DMA setup at that scale."""
    n, d = vecs.shape
    if not force_pallas and n * d * vecs.dtype.itemsize < (2 << 20):
        return jnp.dot(vecs, vecs.T,
                       precision=lax.Precision.HIGHEST).astype(jnp.float32)
    return grammian_pallas(vecs, use_bf16=use_bf16)


# ----------------------------------------------------------------------------
# Plain-JAX glue reproducing the PyTorch control flow exactly.
# For small n_tasks the per-iteration matvec / quad forms are latency-bound,
# so they live in jnp inside the while_loop (no per-iteration kernel launches).
# ----------------------------------------------------------------------------
def _line_solver_scalar(v1v1, v1v2, v2v2):
    gamma_mid = (v2v2 - v1v2) / (v1v1 + v2v2 - 2.0 * v1v2 + 1e-8)
    cost_mid = v2v2 + gamma_mid * (v1v2 - v2v2)
    gamma = jnp.where(v1v2 >= v1v1, 1.0, jnp.where(v1v2 >= v2v2, 0.0, gamma_mid))
    cost = jnp.where(v1v2 >= v1v1, v1v1, jnp.where(v1v2 >= v2v2, v2v2, cost_mid))
    return gamma, cost


def _planar_solver(grammian, n):
    i_triu_np, j_triu_np = np.triu_indices(n, 1)
    i_triu = jnp.asarray(i_triu_np, dtype=jnp.int32)
    j_triu = jnp.asarray(j_triu_np, dtype=jnp.int32)
    vivj = grammian[i_triu, j_triu]
    vivi = grammian[i_triu, i_triu]
    vjvj = grammian[j_triu, j_triu]
    gamma = (vjvj - vivj) / (vivi + vjvj - 2.0 * vivj + 1e-8)
    gamma = jnp.where(vivj < vjvj, gamma, 0.0)
    gamma = jnp.where(vivj < vivi, gamma, 1.0)
    cost = vjvj + gamma * (vivj - vjvj)
    cost = jnp.where(vivj < vjvj, cost, vjvj)
    cost = jnp.where(vivj < vivi, cost, vivi)
    offset = jnp.argmin(cost)
    i_min = i_triu[offset]
    j_min = j_triu[offset]
    sol = jnp.zeros((n,), dtype=jnp.float32)
    sol = sol.at[i_min].set(gamma[offset])
    sol = sol.at[j_min].set(1.0 - gamma[offset])
    return sol


def _projection_to_simplex(gamma, i_grid):
    # Sort-free simplex projection: O(n^2) rank-by-comparison (broadcast
    # compare + row-sum) instead of jnp.sort/cumsum — no sort HLO inside the
    # 250-iteration loop.
    n = gamma.shape[0]
    idx = jnp.arange(n)
    greater = gamma[None, :] > gamma[:, None]
    tie_before = (gamma[None, :] == gamma[:, None]) & (idx[None, :] < idx[:, None])
    rank = jnp.sum((greater | tie_before).astype(jnp.int32), axis=1)   # stable desc rank
    kpos = idx[:, None]
    tmp_sum = jnp.sum(jnp.where(rank[None, :] <= kpos, gamma[None, :], 0.0), axis=1)
    sorted_g = jnp.sum(jnp.where(rank[None, :] == kpos, gamma[None, :], 0.0), axis=1)
    tmp_max = (tmp_sum - 1.0) / i_grid
    cond = tmp_max[:-1] > sorted_g[1:]
    has_nz = jnp.any(cond)
    first = jnp.argmax(cond)          # first True (0 if none, guarded by has_nz)
    tmax_f = jnp.where(has_nz, tmp_max[:-1][first], tmp_max[-1])
    return jnp.maximum(gamma - tmax_f, 0.0)


def _next_point(cur_val, grad, n_float, i_grid):
    proj_grad = grad - jnp.sum(grad) / n_float
    neg = proj_grad < 0.0
    pos = proj_grad > 0.0
    safe_neg = jnp.where(neg, proj_grad, -1.0)
    safe_pos = jnp.where(pos, proj_grad, 1.0)
    tm1 = -cur_val / safe_neg
    tm2 = (1.0 - cur_val) / safe_pos
    valid1 = neg & (tm1 > 1e-7)
    valid2 = pos & (tm2 > 1e-7)
    inf = jnp.float32(jnp.inf)
    min1 = jnp.min(jnp.where(valid1, tm1, inf))
    min2 = jnp.min(jnp.where(valid2, tm2, inf))
    t = jnp.where(jnp.any(valid1), min1, jnp.float32(1.0))
    t = jnp.where(jnp.any(valid2), jnp.minimum(t, min2), t)
    nxt = proj_grad * t + cur_val
    return _projection_to_simplex(nxt, i_grid)


def min_norm_solver(vecs, max_iter=250, stop_crit=1e-6,
                    force_pallas=False, use_bf16_grammian=False):
    """Equivalent of MinNormSolver(n_tasks, max_iter, stop_crit).forward(vecs)."""
    n = vecs.shape[0]
    if n == 1:
        return vecs[0]

    if n == 2:
        v1v1 = jnp.dot(vecs[0], vecs[0])
        v1v2 = jnp.dot(vecs[0], vecs[1])
        v2v2 = jnp.dot(vecs[1], vecs[1])
        gamma, _cost = _line_solver_scalar(v1v1, v1v2, v2v2)
        return jnp.stack([gamma, 1.0 - gamma])

    grammian = compute_grammian(vecs, force_pallas=force_pallas,
                                use_bf16=use_bf16_grammian)

    sol0 = _planar_solver(grammian, n)
    grad0 = -(grammian @ sol0)  # grad = -(G @ sol), carried across iterations
    i_grid = jnp.arange(1, n + 1, dtype=jnp.float32)
    n_float = jnp.float32(n)
    stop_crit = jnp.float32(stop_crit)

    # TODO(synk): best-latency option would be to move the whole Frank-Wolfe
    # loop into a single pallas_call with G resident in VMEM scratch (n<=128 →
    # G<=64 KiB); kept as a lax.while_loop of tiny jnp ops for robustness.
    def cond_fn(carry):
        it, _sol, _grad, done = carry
        return jnp.logical_and(it < max_iter, jnp.logical_not(done))

    def body_fn(carry):
        it, sol, grad, _done = carry
        new_point = _next_point(sol, grad, n_float, i_grid)
        gp = grammian @ new_point                 # the ONE matvec per iteration
        v1v1 = -jnp.dot(sol, grad)                # sol^T G sol
        v1v2 = -jnp.dot(new_point, grad)          # sol^T G p   (G symmetric)
        v2v2 = jnp.dot(new_point, gp)             # p^T G p
        gamma, _cost = _line_solver_scalar(v1v1, v1v2, v2v2)
        new_sol = gamma * sol + (1.0 - gamma) * new_point
        new_grad = gamma * grad - (1.0 - gamma) * gp   # = -(G @ new_sol)
        change = jnp.sum(jnp.abs(new_sol - sol))
        converged = change < stop_crit
        # PyTorch returns the *old* sol_vec when converged.
        out_sol = jnp.where(converged, sol, new_sol)
        out_grad = jnp.where(converged, grad, new_grad)
        return it + 1, out_sol, out_grad, converged

    _, sol, _, _ = lax.while_loop(
        cond_fn, body_fn, (jnp.int32(0), sol0, grad0, jnp.bool_(False))
    )
    return sol


# ----------------------------------------------------------------------------
# Demo
# ----------------------------------------------------------------------------
if __name__ == "__main__":
    key = jax.random.PRNGKey(0)
    n_tasks, dim = 8, 32
    vecs = jax.random.normal(key, (n_tasks, dim), dtype=jnp.float32)

    # Sanity-check the Pallas Grammian on the single-tile, multi-tile-ragged
    # and multi-tile-exact paths against a high-precision XLA dot.
    for (nn, dd, tkk) in ((8, 32, None), (8, 520, 128), (8, 1024, 128)):
        kk = jax.random.PRNGKey(nn * 1000 + dd)
        vv = jax.random.normal(kk, (nn, dd), dtype=jnp.float32)
        g_pl = jax.jit(functools.partial(grammian_pallas, tk=tkk))(vv)
        g_pl = jax.block_until_ready(g_pl)
        g_ref = jnp.dot(vv, vv.T, precision=lax.Precision.HIGHEST)
        np.testing.assert_allclose(np.asarray(g_pl), np.asarray(g_ref),
                                   rtol=2e-2, atol=1e-2)

    # Full solver; force the Pallas Grammian path so the kernel is exercised
    # end-to-end even at this small demo scale.
    solver = jax.jit(functools.partial(min_norm_solver, max_iter=250,
                                       stop_crit=1e-6, force_pallas=True))
    sol = jax.block_until_ready(solver(vecs))

    assert sol.shape == (n_tasks,)
    assert bool(jnp.all(jnp.isfinite(sol)))
    assert abs(float(jnp.sum(sol)) - 1.0) < 1e-3   # solution lies on the simplex
    print("KERNEL_OK")
</pallas_src>

<mosaic_0001>
module attributes {stable_mosaic.version = 11 : i64} {
  func.func @_grammian_kernel(%arg0: i32, %arg1: i32, %arg2: memref<8x32xf32, #tpu.memory_space<vmem>>, %arg3: memref<1x8x8xf32, #tpu.memory_space<vmem>>) attributes {dimension_semantics = [#tpu.dimension_semantics<parallel>, #tpu.dimension_semantics<arbitrary>], iteration_bounds = array<i64: 1, 1>, scalar_prefetch = 0 : i64, scratch_operands = 0 : i64, tpu.core_type = #tpu.core_type<tc>, window_params = [{transform_indices = @transform_0, window_bounds = array<i64: 8, 32>}, {transform_indices = @transform_1, window_bounds = array<i64: 1, 8, 8>}]} {
    %c0_i32 = arith.constant 0 : i32
    %0 = arith.cmpi eq, %arg1, %c0_i32 : i32
    %1 = arith.extui %0 : i1 to i32
    %c0_i32_0 = arith.constant 0 : i32
    %2 = arith.cmpi ne, %1, %c0_i32_0 : i32
    scf.if %2 {
      %cst_8 = arith.constant 0.000000e+00 : f32
      %11 = vector.broadcast %cst_8 : f32 to vector<8x8xf32>
      %c0_9 = arith.constant 0 : index
      %c0_10 = arith.constant 0 : index
      %c0_11 = arith.constant 0 : index
      %12 = vector.load %arg3[%c0_9, %c0_10, %c0_11] : memref<1x8x8xf32, #tpu.memory_space<vmem>>, vector<1x8x8xf32>
      %13 = vector.shape_cast %12 : vector<1x8x8xf32> to vector<8x8xf32>
      %14 = vector.shape_cast %11 : vector<8x8xf32> to vector<1x8x8xf32>
      tpu.vector_store %arg3[%c0_9, %c0_10, %c0_11], %14 {strides = array<i32>} : memref<1x8x8xf32, #tpu.memory_space<vmem>>, vector<1x8x8xf32>,
    } else {
    }
    %c0 = arith.constant 0 : index
    %c0_1 = arith.constant 0 : index
    %3 = vector.load %arg2[%c0, %c0_1] : memref<8x32xf32, #tpu.memory_space<vmem>>, vector<8x32xf32>
    %c0_2 = arith.constant 0 : index
    %c0_3 = arith.constant 0 : index
    %c0_4 = arith.constant 0 : index
    %4 = vector.load %arg3[%c0_2, %c0_3, %c0_4] : memref<1x8x8xf32, #tpu.memory_space<vmem>>, vector<1x8x8xf32>
    %5 = vector.shape_cast %4 : vector<1x8x8xf32> to vector<8x8xf32>
    %cst = arith.constant dense<0.000000e+00> : vector<8x8xf32>
    %6 = tpu.matmul %3, %3, %cst {dimension_numbers = #tpu.dot_dimension_numbers<[1], [1], [0], [0], [0, 0, 1, 0], [], []>} : vector<8x32xf32>, vector<8x32xf32>, vector<8x8xf32> -> vector<8x8xf32>
    %7 = arith.addf %5, %6 : vector<8x8xf32>
    %c0_5 = arith.constant 0 : index
    %c0_6 = arith.constant 0 : index
    %c0_7 = arith.constant 0 : index
    %8 = vector.load %arg3[%c0_5, %c0_6, %c0_7] : memref<1x8x8xf32, #tpu.memory_space<vmem>>, vector<1x8x8xf32>
    %9 = vector.shape_cast %8 : vector<1x8x8xf32> to vector<8x8xf32>
    %10 = vector.shape_cast %7 : vector<8x8xf32> to vector<1x8x8xf32>
    tpu.vector_store %arg3[%c0_5, %c0_6, %c0_7], %10 {strides = array<i32>} : memref<1x8x8xf32, #tpu.memory_space<vmem>>, vector<1x8x8xf32>,
    return
  }
  func.func @transform_0(%arg0: i32, %arg1: i32) -> (i32, i32) {
    %c1_i32 = arith.constant 1 : i32
    %0 = arith.muli %arg0, %c1_i32 : i32
    %1 = arith.addi %0, %arg1 : i32
    %c0_i32 = arith.constant 0 : i32
    %c0_i32_0 = arith.constant 0 : i32
    return %c0_i32, %1 : i32, i32
  }
  func.func @transform_1(%arg0: i32, %arg1: i32) -> (i32, i32, i32) {
    %c0_i32 = arith.constant 0 : i32
    %c0_i32_0 = arith.constant 0 : i32
    %c0_i32_1 = arith.constant 0 : i32
    return %arg0, %c0_i32, %c0_i32_0 : i32, i32, i32
  }
}

</mosaic_0001>

<bundles_post_ra>
// kernel: grammian_pallas.1
= control target key start
LH: loop header
LB: loop body
LE: loop exit
PB: predicated region body
PF: predicated region fallthrough
CT: control target
= control target key end

     0   :  { %6 = vsyncpa [#allocation3], 0  ;;  %s155_s0 = inlined_call_operand.hbm [shape: f32[8,32], index: 0, kind: input, shape index: {}]   ;;  %s156_s1 = inlined_call_operand.hbm [shape: f32[1,8,8], index: 1, kind: output, shape index: {}]  }
   0x1   :  { %7 = vsyncpa [#allocation4], 0  ;;  %s16_s8 = sshll.u32 %s155_s0, 4  ;;  %s136_s9 = smov [#allocation2]   ;;  %s17_s8 = int_to_ptr.hbm [resolvable:$true] %s16_s8 }
   0x2   :  { %s18_s10 = sshll.u32 %s136_s9, 4  ;;  %s19_s10 = int_to_ptr.vmem [resolvable:$true] %s18_s10 }
   0x3   :  { %21 = dma.hbm_to_vmem [thread:$0]  %s17_s8, 128, %s19_s10, [#allocation3]  }
   0x4   :  { %132 = dma.done.wait [#allocation3], 128  }
   0x5   :  { %133 = vsyncadd [#allocation3], 4294967168  ;;  %vm31_vm0 = vcmask 64512   ;;  %v137_v0 = vmov 0.0   ;;  %vm35_vm1 = vcmask 261120   ;;  %v33_v1 = vld [vmem:[#allocation2] sm:$0xff] }
   0x6   :  { %32 = vst.msk [vmem:[#allocation5] sm:$0xff] %vm31_vm0, %v137_v0  ;;  %79 = vmatpush.xpose.msk.msra.mxu0 %vm35_vm1, %v33_v1  ;;  %s138_s11 = smov [#allocation5]   ;;  %s69_s0 = sshll.u32 %s156_s1, 4  ;;  %s70_s0 = int_to_ptr.hbm [resolvable:$true] %s69_s0 }
   0x7   :  { %s67_s12 = sshll.u32 %s138_s11, 4  ;;  %s68_s12 = int_to_ptr.vmem [resolvable:$true] %s67_s12 }
   0x9   :  { %80 = vmatmul.msk.f32.vlgmr.msra.gmra.mxu0 %vm35_vm1, %v33_v1 }
   0xd   :  { %v34_v2 = vld [vmem:[#allocation5] sm:$0xff] }
  0x86   :  { %v56_v3 = vpop.f32.mrf.mxu0 }
  0x87   :  { %v59_v4 = vadd.f32 %v56_v3, %v34_v2 }
  0x89   :  { %61 = vst.msk [vmem:[#allocation5] sm:$0xff] %vm31_vm0, %v59_v4 }
  0x8a   :  { %72 = dma.vmem_to_hbm [thread:$0]  %s68_s12, 128, %s70_s0, [#allocation4]  }
  0x8b   :  { %134 = dma.done.wait [#allocation4], 128  }
  0x8c   :  { %135 = vsyncadd [#allocation4], 4294967168 }
  0x8d   :  { %77 = vsyncpa [#allocation3], 1 }
  0x8e   :  { %78 = vsyncpa [#allocation4], 1 }

</bundles_post_ra>
